<compile_context>
chip_gen: v7x
topology: tpu7x:2x2x1
jax: 0.10.0
libtpu: 0.0.40
codegen_flags: <defaults>
</compile_context>

<pallas_src>
import functools
import math

import jax
import jax.numpy as jnp
from jax import lax
from jax.experimental import pallas as pl
from jax.experimental.pallas import tpu as pltpu


def _round_up(x, mult):
    return ((x + mult - 1) // mult) * mult


def _arcface_kernel(x_ref, wt_ref, y_ref, inv_n_ref, out_ref, *,
                    s, cos_m, sin_m, tk, class_axis):
    # x_ref:     (TB, D)  compute_dtype  raw (un-normalized) embeddings
    # wt_ref:    (D, TK)  compute_dtype  pre-normalized W, transposed (K on lanes)
    # y_ref:     (TB, 1)  i32            class labels
    # inv_n_ref: (TB, 1)  f32            1 / max(||x||, 1e-12), precomputed
    # out_ref:   (TB, TK)                scaled ArcFace logits
    j = pl.program_id(class_axis)

    # Raw matmul on the MXU (f32 accumulation).
    raw = jnp.dot(x_ref[...], wt_ref[...],
                  preferred_element_type=jnp.float32)            # (TB, TK)

    # cos(theta): scale by the hoisted per-row 1/||x|| (W already normalized).
    logits = raw * inv_n_ref[...]                                # (TB, TK) f32

    # Label-column mask via local column ids (no full-tile +j*tk add).
    y_local = y_ref[...] - j * tk                                # (TB, 1)
    col = lax.broadcasted_iota(jnp.int32, logits.shape, 1)
    is_label = col == y_local                                    # (TB, TK)

    # Margin math only on the (TB, 1) label-column cosine:
    #   cos(acos(c) + m) = c*cos(m) - sqrt(1 - c^2)*sin(m),  theta in [0, pi].
    c_lab = jnp.sum(jnp.where(is_label, logits, 0.0),
                    axis=-1, keepdims=True)                      # (TB, 1)
    c = jnp.clip(c_lab, -1.0 + 1e-07, 1.0 - 1e-07)
    target = c * cos_m - jnp.sqrt(1.0 - c * c) * sin_m           # (TB, 1)

    out = jnp.where(is_label, target, logits)
    out_ref[...] = (out * s).astype(out_ref.dtype)


def arcface_forward(x, W, y, *, s, m, block_b=1024, block_k=512,
                    compute_dtype=jnp.float32, out_dtype=jnp.float32):
    """ArcFace head forward.

    x: (B, n_embed) embeddings, W: (n_keyword, n_embed) weights,
    y: (B,) int labels.  Returns (B, n_keyword) scaled logits.
    """
    B, D = x.shape
    K, D2 = W.shape
    assert D == D2

    x32 = x.astype(jnp.float32)

    # Hoisted out of the kernel grid (computed once, not per class tile):
    #  * per-row 1/||x||  (matches F.normalize: divide by max(norm, 1e-12))
    #  * normalized W, transposed to (D, K) so K sits on lanes.
    inv_xnorm = 1.0 / jnp.maximum(
        jnp.sqrt(jnp.sum(x32 * x32, axis=1, keepdims=True)), 1e-12)   # (B,1) f32
    w32 = W.astype(jnp.float32)
    w_norm = jnp.maximum(jnp.sqrt(jnp.sum(w32 * w32, axis=1, keepdims=True)), 1e-12)
    wT = (w32 / w_norm).T.astype(compute_dtype)                        # (D, K)

    # bf16 fast path: cast x once here (halves x HBM traffic, no in-kernel cast).
    xc = x32.astype(compute_dtype)

    # Tile sizes: lane-dense output (TK multiple of 128), sublane-aligned TB.
    tb = min(block_b, _round_up(B, 8))
    tk = min(block_k, _round_up(K, 128))
    b_pad = _round_up(B, tb)
    k_pad = _round_up(K, tk)

    if b_pad != B:
        # NOTE: padded rows get label 0 (margin lands on column 0 of class
        # tile 0); they are sliced off below and must never be reused.
        xc = jnp.pad(xc, ((0, b_pad - B), (0, 0)))
        inv_xnorm = jnp.pad(inv_xnorm, ((0, b_pad - B), (0, 0)))
        y = jnp.pad(y, (0, b_pad - B))
    if k_pad != K:
        wT = jnp.pad(wT, ((0, 0), (0, k_pad - K)))
    y2d = y.astype(jnp.int32).reshape(b_pad, 1)

    n_b, n_k = b_pad // tb, k_pad // tk
    itemsize = jnp.dtype(compute_dtype).itemsize
    out_itemsize = jnp.dtype(out_dtype).itemsize

    # Streaming direction: re-stream whichever operand costs fewer repeated
    # HBM bytes — W once per batch tile (batch-major) vs x (+ y, + 1/||x||,
    # lane-padded to 128) once per class tile (class-major).
    w_restream = n_b * k_pad * D * itemsize
    x_restream = n_k * b_pad * (D * itemsize + 2 * 128 * 4)
    batch_major = w_restream <= x_restream

    if batch_major:
        grid = (n_b, n_k)
        class_axis = 1
        x_map = lambda i, j: (i, 0)
        w_map = lambda i, j: (0, j)
        r_map = lambda i, j: (i, 0)
        o_map = lambda i, j: (i, j)
    else:
        grid = (n_k, n_b)
        class_axis = 0
        x_map = lambda j, i: (i, 0)
        w_map = lambda j, i: (0, j)
        r_map = lambda j, i: (i, 0)
        o_map = lambda j, i: (i, j)

    # Double-buffered VMEM footprint (the (tb, 1) inputs pad to 128 lanes).
    vmem_est = 2 * (tb * D * itemsize + D * tk * itemsize
                    + 2 * tb * 128 * 4 + tb * tk * out_itemsize)
    vmem_limit = max(32 << 20, min(int(1.5 * vmem_est) + (2 << 20), 96 << 20))

    kernel = functools.partial(_arcface_kernel, s=float(s),
                               cos_m=math.cos(m), sin_m=math.sin(m),
                               tk=tk, class_axis=class_axis)

    out = pl.pallas_call(
        kernel,
        out_shape=jax.ShapeDtypeStruct((b_pad, k_pad), out_dtype),
        grid_spec=pltpu.PrefetchScalarGridSpec(
            num_scalar_prefetch=0,
            grid=grid,
            in_specs=[
                pl.BlockSpec((tb, D), x_map),
                pl.BlockSpec((D, tk), w_map),
                pl.BlockSpec((tb, 1), r_map),
                pl.BlockSpec((tb, 1), r_map),
            ],
            out_specs=pl.BlockSpec((tb, tk), o_map),
        ),
        compiler_params=pltpu.CompilerParams(
            dimension_semantics=("parallel", "parallel"),
            vmem_limit_bytes=vmem_limit,
        ),
        cost_estimate=pl.CostEstimate(
            flops=2 * b_pad * k_pad * D,
            transcendentals=b_pad * n_k,
            bytes_accessed=(b_pad * D * itemsize
                            + k_pad * D * itemsize
                            + out_itemsize * b_pad * k_pad
                            + 8 * b_pad),
        ),
    )(xc, wT, y2d, inv_xnorm)

    return out[:B, :K]


def _reference(x, W, y, *, s, m):
    xn = x / jnp.maximum(jnp.linalg.norm(x, axis=1, keepdims=True), 1e-12)
    wn = W / jnp.maximum(jnp.linalg.norm(W, axis=1, keepdims=True), 1e-12)
    logits = xn @ wn.T
    theta = jnp.arccos(jnp.clip(logits, -1.0 + 1e-07, 1.0 - 1e-07))
    target = jnp.cos(theta + m)
    one_hot = jax.nn.one_hot(y, W.shape[0], dtype=jnp.float32)
    return (logits * (1 - one_hot) + target * one_hot) * s


if __name__ == "__main__":
    s_scale, margin = 30.0, 0.5
    key = jax.random.PRNGKey(0)

    # Case 1: tiny shapes (single tile after padding), batch-major.
    # Case 2: K not a multiple of 128, multiple tiles on both axes; small B
    #         vs larger K triggers the class-major (W-resident) flip.
    # Case 3: multiple batch tiles, batch-major streaming.
    cases = [
        dict(B=8, D=32, K=16, block_b=8, block_k=128),
        dict(B=16, D=32, K=300, block_b=8, block_k=128),
        dict(B=64, D=32, K=128, block_b=16, block_k=128),
    ]
    for cfg in cases:
        B, D, K = cfg["B"], cfg["D"], cfg["K"]
        kx, kw, ky, key = jax.random.split(key, 4)

        # x: output of the embedding model (identity embedding here)
        x = jax.random.normal(kx, (B, D), dtype=jnp.float32)
        # W: nn.Parameter(n_keyword, n_embed) with xavier_uniform_ init
        bound = math.sqrt(6.0 / (K + D))
        W = jax.random.uniform(kw, (K, D), dtype=jnp.float32,
                               minval=-bound, maxval=bound)
        # y: integer class labels in [0, n_keyword)
        y = jax.random.randint(ky, (B,), 0, K, dtype=jnp.int32)

        ref = _reference(x, W, y, s=s_scale, m=margin)

        # f32 path: matches the reference closely.
        out = arcface_forward(x, W, y, s=s_scale, m=margin,
                              block_b=cfg["block_b"], block_k=cfg["block_k"])
        out = jax.block_until_ready(out)
        assert out.shape == (B, K)
        assert jnp.allclose(out, ref, atol=1e-4, rtol=1e-4), (
            f"f32 max abs err {jnp.max(jnp.abs(out - ref))}")

        # bf16 MXU-operand path (f32 accumulation) — v6e/v7x fast path.
        out_bf16 = arcface_forward(x, W, y, s=s_scale, m=margin,
                                   block_b=cfg["block_b"],
                                   block_k=cfg["block_k"],
                                   compute_dtype=jnp.bfloat16)
        out_bf16 = jax.block_until_ready(out_bf16)
        assert out_bf16.shape == (B, K)
        assert float(jnp.max(jnp.abs(out_bf16 - ref))) < 0.5, (
            f"bf16 max abs err {jnp.max(jnp.abs(out_bf16 - ref))}")

    print("KERNEL_OK")
</pallas_src>

<mosaic_0001>
module attributes {stable_mosaic.version = 11 : i64} {
  func.func @_arcface_kernel(%arg0: i32, %arg1: i32, %arg2: memref<8x32xf32, #tpu.memory_space<vmem>>, %arg3: memref<32x128xf32, #tpu.memory_space<vmem>>, %arg4: memref<8x1xi32, #tpu.memory_space<vmem>>, %arg5: memref<8x1xf32, #tpu.memory_space<vmem>>, %arg6: memref<8x128xf32, #tpu.memory_space<vmem>>) attributes {dimension_semantics = [#tpu.dimension_semantics<parallel>, #tpu.dimension_semantics<parallel>], iteration_bounds = array<i64: 1, 1>, scalar_prefetch = 0 : i64, scratch_operands = 0 : i64, tpu.core_type = #tpu.core_type<tc>, window_params = [{transform_indices = @transform_0, window_bounds = array<i64: 8, 32>}, {transform_indices = @transform_1, window_bounds = array<i64: 32, 128>}, {transform_indices = @transform_2, window_bounds = array<i64: 8, 1>}, {transform_indices = @transform_3, window_bounds = array<i64: 8, 1>}, {transform_indices = @transform_4, window_bounds = array<i64: 8, 128>}]} {
    %c0 = arith.constant 0 : index
    %c0_0 = arith.constant 0 : index
    %0 = vector.load %arg2[%c0, %c0_0] : memref<8x32xf32, #tpu.memory_space<vmem>>, vector<8x32xf32>
    %c0_1 = arith.constant 0 : index
    %c0_2 = arith.constant 0 : index
    %1 = vector.load %arg3[%c0_1, %c0_2] : memref<32x128xf32, #tpu.memory_space<vmem>>, vector<32x128xf32>
    %cst = arith.constant dense<0.000000e+00> : vector<8x128xf32>
    %2 = tpu.matmul %0, %1, %cst {dimension_numbers = #tpu.dot_dimension_numbers<[1], [0], [0], [1], [0, 0, 1, 1], [], []>} : vector<8x32xf32>, vector<32x128xf32>, vector<8x128xf32> -> vector<8x128xf32>
    %c0_3 = arith.constant 0 : index
    %c0_4 = arith.constant 0 : index
    %3 = vector.load %arg5[%c0_3, %c0_4] : memref<8x1xf32, #tpu.memory_space<vmem>>, vector<8x1xf32>
    %4 = vector.broadcast %3 : vector<8x1xf32> to vector<8x128xf32>
    %5 = arith.mulf %2, %4 : vector<8x128xf32>
    %c0_5 = arith.constant 0 : index
    %c0_6 = arith.constant 0 : index
    %6 = vector.load %arg4[%c0_5, %c0_6] : memref<8x1xi32, #tpu.memory_space<vmem>>, vector<8x1xi32>
    %c128_i32 = arith.constant 128 : i32
    %7 = arith.muli %arg0, %c128_i32 : i32
    %8 = vector.broadcast %7 : i32 to vector<8x1xi32>
    %9 = arith.subi %6, %8 : vector<8x1xi32>
    %10 = tpu.iota {dimensions = array<i32: 1>} : vector<8x128xi32>
    %11 = vector.broadcast %9 : vector<8x1xi32> to vector<8x128xi32>
    %12 = arith.cmpi eq, %10, %11 : vector<8x128xi32>
    %cst_7 = arith.constant 0.000000e+00 : f32
    %13 = vector.broadcast %cst_7 : f32 to vector<8x128xf32>
    %14 = arith.select %12, %5, %13 : vector<8x128xi1>, vector<8x128xf32>
    %cst_8 = arith.constant dense<0.000000e+00> : vector<8xf32>
    %15 = vector.multi_reduction <add>, %14, %cst_8 [1] : vector<8x128xf32> to vector<8xf32>
    %16 = vector.shape_cast %15 : vector<8xf32> to vector<8x1xf32>
    %cst_9 = arith.constant -0.99999988 : f32
    %cst_10 = arith.constant 0.99999988 : f32
    %17 = vector.broadcast %cst_9 : f32 to vector<8x1xf32>
    %18 = arith.maximumf %17, %16 : vector<8x1xf32>
    %19 = vector.broadcast %cst_10 : f32 to vector<8x1xf32>
    %20 = arith.minimumf %19, %18 : vector<8x1xf32>
    %cst_11 = arith.constant 0.87758255 : f32
    %21 = vector.broadcast %cst_11 : f32 to vector<8x1xf32>
    %22 = arith.mulf %20, %21 : vector<8x1xf32>
    %23 = arith.mulf %20, %20 : vector<8x1xf32>
    %cst_12 = arith.constant 1.000000e+00 : f32
    %24 = vector.broadcast %cst_12 : f32 to vector<8x1xf32>
    %25 = arith.subf %24, %23 : vector<8x1xf32>
    %26 = math.sqrt %25 : vector<8x1xf32>
    %cst_13 = arith.constant 0.47942555 : f32
    %27 = vector.broadcast %cst_13 : f32 to vector<8x1xf32>
    %28 = arith.mulf %26, %27 : vector<8x1xf32>
    %29 = arith.subf %22, %28 : vector<8x1xf32>
    %30 = vector.shape_cast %29 : vector<8x1xf32> to vector<8x1xf32>
    %31 = vector.broadcast %30 : vector<8x1xf32> to vector<8x128xf32>
    %32 = arith.select %12, %31, %5 : vector<8x128xi1>, vector<8x128xf32>
    %cst_14 = arith.constant 3.000000e+01 : f32
    %33 = vector.broadcast %cst_14 : f32 to vector<8x128xf32>
    %34 = arith.mulf %32, %33 : vector<8x128xf32>
    %c0_15 = arith.constant 0 : index
    %c0_16 = arith.constant 0 : index
    %35 = vector.load %arg6[%c0_15, %c0_16] : memref<8x128xf32, #tpu.memory_space<vmem>>, vector<8x128xf32>
    tpu.vector_store %arg6[%c0_15, %c0_16], %34 {strides = array<i32>} : memref<8x128xf32, #tpu.memory_space<vmem>>, vector<8x128xf32>,
    return
  }
  func.func @transform_0(%arg0: i32, %arg1: i32) -> (i32, i32) {
    %c0_i32 = arith.constant 0 : i32
    %c0_i32_0 = arith.constant 0 : i32
    return %arg1, %c0_i32 : i32, i32
  }
  func.func @transform_1(%arg0: i32, %arg1: i32) -> (i32, i32) {
    %c0_i32 = arith.constant 0 : i32
    %c0_i32_0 = arith.constant 0 : i32
    return %c0_i32, %arg0 : i32, i32
  }
  func.func @transform_2(%arg0: i32, %arg1: i32) -> (i32, i32) {
    %c0_i32 = arith.constant 0 : i32
    %c0_i32_0 = arith.constant 0 : i32
    return %arg1, %c0_i32 : i32, i32
  }
  func.func @transform_3(%arg0: i32, %arg1: i32) -> (i32, i32) {
    %c0_i32 = arith.constant 0 : i32
    %c0_i32_0 = arith.constant 0 : i32
    return %arg1, %c0_i32 : i32, i32
  }
  func.func @transform_4(%arg0: i32, %arg1: i32) -> (i32, i32) {
    %c0_i32 = arith.constant 0 : i32
    return %arg1, %arg0 : i32, i32
  }
}

</mosaic_0001>

<bundles_post_ra>
// kernel: tpu_custom_call.1
= control target key start
LH: loop header
LB: loop body
LE: loop exit
PB: predicated region body
PF: predicated region fallthrough
CT: control target
= control target key end

     0   :  { %9 = vsyncpa [#allocation3], 0  ;;  %s314_s0 = inlined_call_operand.vmem [shape: f32[8,32], index: 0, kind: input, shape index: {}]   ;;  %s315_s1 = inlined_call_operand.hbm [shape: f32[32,128], index: 1, kind: input, shape index: {}]   ;;  %s316_s2 = inlined_call_operand.vmem [shape: s32[8,1], index: 2, kind: input, shape index: {}]   ;;  %s317_s3 = inlined_call_operand.vmem [shape: f32[8,1], index: 3, kind: input, shape index: {}]   ;;  %s318_s4 = inlined_call_operand.hbm [shape: f32[8,128], index: 4, kind: output, shape index: {}]  }
   0x1   :  { %10 = vsyncpa [#allocation4], 0  ;;  %s246_s15 = smov [#allocation2]   ;;  %s198_s19 = scalar_lea.hbm %s315_s1, 512 }
   0x2   :  { %s18_s16 = sshll.u32 %s246_s15, 4  ;;  %p199_p0 = scmp.ne.s32.totalorder %s315_s1, %s198_s19  ;;  %s19_s16 = int_to_ptr.vmem [resolvable:$true] %s18_s16 }
   0x3   :  { %p202_p1 = scmp.lt.u32.totalorder %s198_s19, %s315_s1 }
   0x5   :  { %p204_p2 = pnand %p202_p1, %p199_p0 }
   0x7   :  { %207 = shalt.err (!%p204_p2)
}
   0x8   :  { %s208_s24 = scalar_lea.vmem %s19_s16, 512  ;;  %p213_p4 = scmp.lt.s32.totalorder %s19_s16, %s19_s16 }
   0x9   :  { %p209_p3 = scmp.ne.s32.totalorder %s19_s16, %s208_s24  ;;  %p214_p5 = scmp.lt.s32.totalorder %s208_s24, %s208_s24 }
   0xb   :  { %p215_p6 = por %p214_p5, %p213_p4 }
   0xd   :  { %p216_p7 = pnand %p215_p6, %p209_p3 }
   0xf   :  { %219 = shalt.err (!%p216_p7)
}
  0x10   :  { %s247_s25 = smov 128   ;;  %s248_s26 = smov 8  }
  0x11   :  { %24 = dma.hbm_to_vmem [thread:$0]  %s315_s1, 512, %s19_s16, [#allocation3], %s247_s25, %s247_s25, %s248_s26  }
  0x12   :  { %242 = dma.done.wait [#allocation3], 512  }
  0x13   :  { %243 = vsyncadd [#allocation3], 4294966784  ;;  %v249_v0 = vmov 0.0|0.0   ;;  %vm250_vm0 = vmmov 0   ;;  %v251_v1 = vmov 0.0   ;;  %v252_v2 = vmov 0  }
  0x14   :  { %181 = vmatprep.subr.bf16.mxu0 %v249_v0  ;;  %178 = vmatprep.mubr.msk.f32.mxu0 %vm250_vm0, %v251_v1  ;;  %v33_v3 = vld [vmem:[#allocation2] sm:$0xff]  ;;  %v34_v4 = vld [vmem:[#allocation2 + $0x8] sm:$0xff]  ;;  %v35_v5 = vld [vmem:[#allocation2 + $0x10] sm:$0xff]  ;;  %vm37_vm1 = vcmask 261120   ;;  %v122_v13 = vlaneseq }
  0x15   :  { %195 = vset.pattern.permute.xlu0 %v252_v2  ;;  %v182_v6 = vpack.c.bf16 %v34_v4, %v33_v3  ;;  %v36_v7 = vld [vmem:[#allocation2 + $0x18] sm:$0xff]  ;;  %v111_v8 = vld [vmem:[%s317_s3] sm:$0xff] }
  0x16   :  { %114 = vperm.xlu0 %195, %v111_v8   ;;  %v185_v9 = vpack.c.bf16 %v36_v7, %v35_v5  ;;  %v118_v10 = vld [vmem:[%s316_s2] sm:$0xff]  ;;  %v123_v14 = vand.u32 127, %v122_v13 }
  0x17   :  { %183 = vmatpush3.bf16.msra.mxu0 %v182_v6  ;;  %v32_v11 = vld [vmem:[%s314_s0] sm:$0xff]  ;;  %s253_s0 = smov [#allocation5]  }
  0x18   :  { %184 = vmatprep.subr.bf16.mxu0 %v249_v0  ;;  %s154_s2 = sshll.u32 %s253_s0, 4  ;;  %s155_s2 = int_to_ptr.vmem [resolvable:$true] %s154_s2 }
  0x19   :  { %s220_s3 = scalar_lea.vmem %s155_s2, 128  ;;  %p225_p9 = scmp.lt.s32.totalorder %s155_s2, %s155_s2 }
  0x1a   :  { %125 = vperm.xlu0 %195, %v118_v10   ;;  %p221_p8 = scmp.ne.s32.totalorder %s155_s2, %s220_s3  ;;  %p226_p10 = scmp.lt.s32.totalorder %s220_s3, %s220_s3 }
  0x1b   :  { %186 = vmatpush3.bf16.msra.mxu0 %v185_v9 }
  0x1c   :  { %p227_p11 = por %p226_p10, %p225_p9 }
  0x1e   :  { %179 = vmatmul.mubr.msk.f32.vlgmr.msra.gmra.mrb[0].mxu0 %vm37_vm1, %v32_v11  ;;  %p228_p12 = pnand %p227_p11, %p221_p8 }
  0x95   :  { %v115_v12 = vpop.permute.xlu0 %114 }
  0x99   :  { %v126_v15 = vpop.permute.xlu0 %125 }
  0x9a   :  { %vm127_vm2 = vcmp.eq.s32.totalorder %v123_v14, %v126_v15 }
  0xf1   :  { %v107_v16 = vpop.f32.mrb[0].mxu0 }
  0xf2   :  { %v117_v17 = vmul.f32 %v115_v12, %v107_v16  ;;  %v180_v18 = vpop.f32.mrb[1].mxu0 }
  0xf4   :  { %v128_v19 = vsel %vm127_vm2, %v117_v17, 0.0 }
  0xf5   :  { %129 = vadd.xlane.f32.xlu1 %v128_v19 }
 0x182   :  { %v130_v20 = vpop.xlane.xlu1 %129 }
 0x183   :  { %v164_v21 = vclamps-f32 %v130_v20, 0.9999999 }
 0x185   :  { %v134_v22 = vmul.f32 %v164_v21, %v164_v21  ;;  %v133_v29 = vmul.f32 0.87758255, %v164_v21 }
 0x187   :  { %v135_v23 = vsub.f32 1.0, %v134_v22 }
 0x189   :  { %196 = vrsqrt.f32 %v135_v23  ;;  %vm138_vm3 = vcmp.eq.f32.partialorder %v135_v23, inf  ;;  %v141_v26 = vand.u32 2147483648, %v135_v23  ;;  %vm140_vm4 = vcmp.eq.f32.partialorder %v135_v23, 0.0 }
 0x193   :  { %v197_v24 = vpop.eup %196 }
 0x194   :  { %v137_v25 = vmul.f32 %v197_v24, %v135_v23 }
 0x196   :  { %v139_v27 = vsel %vm138_vm3, %v135_v23, %v137_v25 }
 0x197   :  { %v142_v28 = vsel %vm140_vm4, %v141_v26, %v139_v27 }
 0x198   :  { %v143_v30 = vmul.f32 0.47942555, %v142_v28 }
 0x19a   :  { %v144_v31 = vsub.f32 %v133_v29, %v143_v30 }
 0x19c   :  { %v145_v32 = vsel %vm127_vm2, %v144_v31, %v117_v17 }
 0x19d   :  { %v146_v33 = vmul.f32 30.0, %v145_v32 }
 0x19f   :  { %147 = vst [vmem:[#allocation5] sm:$0xff] %v146_v33 }
 0x1a0   :  { %231 = shalt.err (!%p228_p12)
}
 0x1a1   :  { %s232_s10 = scalar_lea.hbm %s318_s4, 128 }
 0x1a2   :  { %p233_p13 = scmp.ne.s32.totalorder %s318_s4, %s232_s10  ;;  %p236_p0 = scmp.lt.u32.totalorder %s232_s10, %s318_s4 }
 0x1a4   :  { %p238_p1 = pnand %p236_p0, %p233_p13 }
 0x1a6   :  { %241 = shalt.err (!%p238_p1)
}
 0x1a7   :  { %157 = dma.vmem_to_hbm [thread:$0]  %s155_s2, 128, %s318_s4, [#allocation4]  }
 0x1a8   :  { %244 = dma.done.wait [#allocation4], 128  }
 0x1a9   :  { %245 = vsyncadd [#allocation4], 4294967168 }
 0x1aa   :  { %161 = vsyncpa [#allocation3], 1 }
 0x1ab   :  { %162 = vsyncpa [#allocation4], 1 }

</bundles_post_ra>
